<compile_context>
chip_gen: v7x
topology: tpu7x:2x2x1
jax: 0.10.0
libtpu: 0.0.40
codegen_flags: <defaults>
</compile_context>

<pallas_src>
import functools
import math

import jax
import jax.numpy as jnp
from jax.experimental import pallas as pl
from jax.experimental.pallas import tpu as pltpu


# ----------------------------------------------------------------------------
# generation detection & tiling policy
# ----------------------------------------------------------------------------
_KIND = ""
try:
    _KIND = jax.devices()[0].device_kind.lower()
except Exception:  # pragma: no cover - defensive; assume generic TPU
    _KIND = ""

_IS_V7 = "7" in _KIND                       # e.g. "tpu7x"
_IS_V6 = ("v6" in _KIND) and not _IS_V7     # e.g. "tpu v6e"

if _IS_V7:
    _VMEM_LIMIT = 44 * 1024 * 1024          # 64 MiB physical -> stay well under
    _TM_DEF, _TN_DEF, _TK_DEF = 512, 512, 512
    _MIN_BLOCKS_M = 2                       # keep both TensorCores busy
elif _IS_V6:
    _VMEM_LIMIT = 96 * 1024 * 1024          # 128 MiB physical, highest ridge
    _TM_DEF, _TN_DEF, _TK_DEF = 1024, 512, 768
    _MIN_BLOCKS_M = 1
else:                                       # v5e / unknown
    _VMEM_LIMIT = 64 * 1024 * 1024 if _KIND else 48 * 1024 * 1024
    _TM_DEF, _TN_DEF, _TK_DEF = 512, 512, 512
    _MIN_BLOCKS_M = 1


def _round_up(n, m):
    return ((n + m - 1) // m) * m


def _pick_tile(n, max_tile, align, min_blocks=1):
    """Largest multiple of `align` that divides `n` and is <= max_tile.
    If `min_blocks` > 1, additionally caps the tile so the axis is split into
    at least that many blocks (megacore coverage) whenever n allows.
    Falls back to the full dimension only when no aligned divisor exists
    (always a legal block)."""
    cap = min(max_tile, n)
    if min_blocks > 1 and n >= min_blocks * align:
        cap = min(cap, (n // min_blocks // align) * align)
    t = (cap // align) * align
    while t >= align:
        if n % t == 0:
            return t
        t -= align
    return n


def _cparams(dims):
    return pltpu.CompilerParams(dimension_semantics=dims,
                                vmem_limit_bytes=_VMEM_LIMIT)


# ----------------------------------------------------------------------------
# tiled linear: y = x @ w (+ bias) (+ QuickGELU) [+ residual -> second output]
# ----------------------------------------------------------------------------
def _linear_kernel(*refs, nk, has_bias, act, has_res):
    pos = 0
    x_ref = refs[pos]; pos += 1
    w_ref = refs[pos]; pos += 1
    b_ref = None
    if has_bias:
        b_ref = refs[pos]; pos += 1
    r_ref = None
    if has_res:
        r_ref = refs[pos]; pos += 1
    y_ref = refs[pos]; pos += 1
    n_ref = None
    if has_res:
        n_ref = refs[pos]; pos += 1
    acc_ref = refs[pos]

    k = pl.program_id(2)

    @pl.when(k == 0)
    def _():
        acc_ref[...] = jnp.zeros_like(acc_ref)

    acc_ref[...] += jnp.dot(x_ref[...], w_ref[...],
                            preferred_element_type=jnp.float32)

    @pl.when(k == nk - 1)
    def _():
        y = acc_ref[...]
        if has_bias:
            y = y + b_ref[...].astype(jnp.float32)
        if act == "quick_gelu":
            y = y * jax.nn.sigmoid(1.702 * y)
        y_ref[...] = y.astype(y_ref.dtype)
        if has_res:
            n_ref[...] = (y + r_ref[...].astype(jnp.float32)).astype(n_ref.dtype)


def linear(x, w, b=None, act=None, residual=None,
           tm=None, tn=None, tk=None, out_dtype=jnp.bfloat16):
    """x: [M, K] bf16, w: [K, N] bf16, b: [N] f32 (optional),
    residual: [M, N] (optional) -> (y, y+residual) else y."""
    M, K = x.shape
    N = w.shape[1]
    tm = _pick_tile(M, tm or _TM_DEF, 8, min_blocks=_MIN_BLOCKS_M)
    tn = _pick_tile(N, tn or _TN_DEF, 128)
    tk = _pick_tile(K, tk or _TK_DEF, 128)
    nk = K // tk
    has_bias = b is not None
    has_res = residual is not None

    in_specs = [pl.BlockSpec((tm, tk), lambda i, j, k: (i, k)),
                pl.BlockSpec((tk, tn), lambda i, j, k: (k, j))]
    args = [x, w]
    if has_bias:
        in_specs.append(pl.BlockSpec((1, tn), lambda i, j, k: (0, j)))
        args.append(b.reshape(1, N).astype(jnp.float32))
    if has_res:
        in_specs.append(pl.BlockSpec((tm, tn), lambda i, j, k: (i, j)))
        args.append(residual)

    out_shapes = [jax.ShapeDtypeStruct((M, N), out_dtype)]
    out_specs = [pl.BlockSpec((tm, tn), lambda i, j, k: (i, j))]
    if has_res:
        out_shapes.append(jax.ShapeDtypeStruct((M, N), out_dtype))
        out_specs.append(pl.BlockSpec((tm, tn), lambda i, j, k: (i, j)))

    out = pl.pallas_call(
        functools.partial(_linear_kernel, nk=nk, has_bias=has_bias,
                          act=act, has_res=has_res),
        out_shape=tuple(out_shapes),
        grid=(M // tm, N // tn, nk),
        in_specs=in_specs,
        out_specs=tuple(out_specs),
        scratch_shapes=[pltpu.VMEM((tm, tn), jnp.float32)],
        compiler_params=_cparams(("parallel", "parallel", "arbitrary")),
    )(*args)
    if has_res:
        return out[0], out[1]
    return out[0]


# ----------------------------------------------------------------------------
# fused LayerNorm -> linear (full-K block; LN cached in VMEM scratch at j==0)
# ----------------------------------------------------------------------------
def _ln_linear_kernel(x_ref, g_ref, b_ref, w_ref, bias_ref, *rest,
                      act, emit_xnorm, eps):
    if emit_xnorm:
        y_ref, xn_out_ref, xn_sc = rest
    else:
        y_ref, xn_sc = rest
    j = pl.program_id(1)

    @pl.when(j == 0)
    def _():
        x = x_ref[...].astype(jnp.float32)
        mean = jnp.mean(x, axis=-1, keepdims=True)
        xc = x - mean
        var = jnp.mean(xc * xc, axis=-1, keepdims=True)
        xn = xc * jax.lax.rsqrt(var + eps) * g_ref[...] + b_ref[...]
        xn_sc[...] = xn.astype(xn_sc.dtype)
        if emit_xnorm:
            xn_out_ref[...] = xn.astype(xn_out_ref.dtype)

    y = jnp.dot(xn_sc[...], w_ref[...], preferred_element_type=jnp.float32)
    y = y + bias_ref[...].astype(jnp.float32)
    if act == "quick_gelu":
        y = y * jax.nn.sigmoid(1.702 * y)
    y_ref[...] = y.astype(y_ref.dtype)


def ln_linear(x, g, b, w, bias, act=None, emit_xnorm=False,
              tm=None, tn=None, eps=1e-5):
    """LayerNorm(x) @ w + bias (f32 LN math, bf16 matmul inputs, f32 acc)."""
    M, K = x.shape
    N = w.shape[1]
    tm = _pick_tile(M, tm or _TM_DEF, 8, min_blocks=_MIN_BLOCKS_M)
    tn = _pick_tile(N, tn or _TN_DEF, 128)

    out_shapes = [jax.ShapeDtypeStruct((M, N), jnp.bfloat16)]
    out_specs = [pl.BlockSpec((tm, tn), lambda i, j: (i, j))]
    if emit_xnorm:
        out_shapes.append(jax.ShapeDtypeStruct((M, K), jnp.bfloat16))
        out_specs.append(pl.BlockSpec((tm, K), lambda i, j: (i, 0)))

    out = pl.pallas_call(
        functools.partial(_ln_linear_kernel, act=act,
                          emit_xnorm=emit_xnorm, eps=eps),
        out_shape=tuple(out_shapes),
        grid=(M // tm, N // tn),
        in_specs=[pl.BlockSpec((tm, K), lambda i, j: (i, 0)),   # x
                  pl.BlockSpec((1, K), lambda i, j: (0, 0)),    # gamma
                  pl.BlockSpec((1, K), lambda i, j: (0, 0)),    # beta
                  pl.BlockSpec((K, tn), lambda i, j: (0, j)),   # w
                  pl.BlockSpec((1, tn), lambda i, j: (0, j))],  # bias
        out_specs=tuple(out_specs),
        scratch_shapes=[pltpu.VMEM((tm, K), jnp.bfloat16)],
        # j must stay "arbitrary": the LN scratch is only filled at j==0.
        compiler_params=_cparams(("parallel", "arbitrary")),
    )(x, g.reshape(1, K).astype(jnp.float32), b.reshape(1, K).astype(jnp.float32),
      w, bias.reshape(1, N).astype(jnp.float32))
    if emit_xnorm:
        return out[0], out[1]
    return out[0]


# ----------------------------------------------------------------------------
# multi-head attention: q/k/v sliced from the packed QKV buffer via index_maps
# ----------------------------------------------------------------------------
def _attn_kernel(q_ref, k_ref, v_ref, o_ref, *, dh, hpb, s_valid):
    s_pad = q_ref.shape[1]
    if s_valid < s_pad:
        col = jax.lax.broadcasted_iota(jnp.int32, (s_pad, s_pad), 1)
        kmask = col < s_valid
    q_all = q_ref[0]
    k_all = k_ref[0]
    v_all = v_ref[0]
    outs = []
    for hh in range(hpb):                      # static unrolled loop over heads
        sl = slice(hh * dh, (hh + 1) * dh)
        q = q_all[:, sl]
        k = k_all[:, sl]
        v = v_all[:, sl]
        # scale (1/sqrt(dh)) is folded into w_qkv's q columns upstream.
        # NOTE: contracting k's minor dim costs an XLU transpose per head/step;
        # second-order at ViT sizes (MLP GEMMs dominate), accepted.
        s = jax.lax.dot_general(q, k, (((1,), (1,)), ((), ())),
                                preferred_element_type=jnp.float32)
        if s_valid < s_pad:
            s = jnp.where(kmask, s, -1e30)     # mask padded key positions (f32)
        m = jnp.max(s, axis=-1, keepdims=True)
        p = jnp.exp(s - m)
        l = jnp.sum(p, axis=-1, keepdims=True)
        o = jnp.dot(p.astype(jnp.bfloat16), v,
                    preferred_element_type=jnp.float32)
        o = o * pl.reciprocal(l, approx=True)  # softmax divide on the EUP
        outs.append(o)
    o_ref[0] = jnp.concatenate(outs, axis=-1).astype(o_ref.dtype)


def attention(qkv, B, S_pad, D, heads, s_valid):
    """qkv: [B*S_pad, 3D] (q | k | v, heads concatenated by column within each).
    Returns [B*S_pad, D] already in head-concatenated token-major layout."""
    dh = D // heads
    # up to 4 heads per block -> 256-wide lane-dense blocks at CLIP sizes
    hpb_target = max(1, 256 // dh)
    hpb = 1
    for c in range(min(heads, hpb_target), 0, -1):
        if heads % c == 0:
            hpb = c
            break
    n_hp = heads // hpb
    bw = hpb * dh
    assert bw % 128 == 0, "head-group width must be lane aligned (128)"
    qkv3 = qkv.reshape(B, S_pad, 3 * D)

    def q_map(b, hp): return (b, 0, hp)
    def k_map(b, hp): return (b, 0, n_hp + hp)
    def v_map(b, hp): return (b, 0, 2 * n_hp + hp)

    out = pl.pallas_call(
        functools.partial(_attn_kernel, dh=dh, hpb=hpb, s_valid=s_valid),
        out_shape=jax.ShapeDtypeStruct((B, S_pad, D), jnp.bfloat16),
        grid=(B, n_hp),
        in_specs=[pl.BlockSpec((1, S_pad, bw), q_map),
                  pl.BlockSpec((1, S_pad, bw), k_map),
                  pl.BlockSpec((1, S_pad, bw), v_map)],
        out_specs=pl.BlockSpec((1, S_pad, bw), lambda b, hp: (b, 0, hp)),
        compiler_params=_cparams(("parallel", "parallel")),
    )(qkv3, qkv3, qkv3)
    return out.reshape(B * S_pad, D)


# ----------------------------------------------------------------------------
# parameters (shapes mirror nn.MultiheadAttention / nn.Linear of the module)
# ----------------------------------------------------------------------------
def init_params(key, d_model):
    ks = jax.random.split(key, 4)
    f32 = jnp.float32
    std = 0.02
    return {
        "ln1_g": jnp.ones((d_model,), f32), "ln1_b": jnp.zeros((d_model,), f32),
        "ln2_g": jnp.ones((d_model,), f32), "ln2_b": jnp.zeros((d_model,), f32),
        # in_proj_weight^T : [D, 3D] (q | k | v column blocks)
        "w_qkv": std * jax.random.normal(ks[0], (d_model, 3 * d_model), f32),
        "b_qkv": jnp.zeros((3 * d_model,), f32),
        "w_out": std * jax.random.normal(ks[1], (d_model, d_model), f32),
        "b_out": jnp.zeros((d_model,), f32),
        "w_fc": std * jax.random.normal(ks[2], (d_model, 4 * d_model), f32),
        "b_fc": jnp.zeros((4 * d_model,), f32),
        "w_proj": std * jax.random.normal(ks[3], (4 * d_model, d_model), f32),
        "b_proj": jnp.zeros((d_model,), f32),
    }


# ----------------------------------------------------------------------------
# ResidualAttentionBlock.forward(x, idx) -> (x, features)
#   x: [S, B, D] (seq-first, as nn.MultiheadAttention expects); attn_mask=None.
# ----------------------------------------------------------------------------
def residual_attention_block_forward(params, x, idx, *, heads):
    S, B, D = x.shape
    assert D % heads == 0
    dh = D // heads
    S_pad = _round_up(S, 16)          # 16-row pad: full bf16 sublane pairs
    orig_dtype = x.dtype
    bf16 = jnp.bfloat16

    # layout glue: seq-first -> batch-first, cast to bf16 BEFORE the transpose
    xt = jnp.transpose(x.astype(bf16), (1, 0, 2))      # [B, S, D]
    if S_pad > S:
        xt = jnp.pad(xt, ((0, 0), (0, S_pad - S), (0, 0)))
    M = B * S_pad
    x_res = xt.reshape(M, D)                            # residual stream (bf16)

    # fold 1/sqrt(dh) into the q columns of the QKV projection
    scale = 1.0 / math.sqrt(dh)
    col_scale = jnp.concatenate([jnp.full((D,), scale, jnp.float32),
                                 jnp.ones((2 * D,), jnp.float32)])
    w_qkv = (params["w_qkv"] * col_scale[None, :]).astype(bf16)
    b_qkv = params["b_qkv"] * col_scale
    w_out = params["w_out"].astype(bf16)
    w_fc = params["w_fc"].astype(bf16)
    w_proj = params["w_proj"].astype(bf16)

    # ln_1 fused into the QKV projection; also emits x_norm for the features
    qkv, xnorm = ln_linear(x_res, params["ln1_g"], params["ln1_b"],
                           w_qkv, b_qkv, emit_xnorm=True)      # [M,3D], [M,D]

    # multi-head self attention (q/k/v sliced via BlockSpec, no XLA transposes)
    ah = attention(qkv, B, S_pad, D, heads, s_valid=S)          # [M, D]

    # out projection; residual add fused into the epilogue
    attn_o, x_res = linear(ah, w_out, params["b_out"], residual=x_res)

    # ln_2 + c_fc + QuickGELU fused
    h = ln_linear(x_res, params["ln2_g"], params["ln2_b"],
                  w_fc, params["b_fc"], act="quick_gelu")       # [M, 4D]

    # c_proj; residual add fused into the epilogue
    mlp_o, x_res = linear(h, w_proj, params["b_proj"], residual=x_res)

    # feature dict: [B, S, D] (the PyTorch .permute(1, 0, 2)); pad stripped
    # only when it exists (no-op copy avoided when S % 16 == 0).
    def feat(t):
        t = t.reshape(B, S_pad, D)
        if S_pad > S:
            t = t[:, :S, :]
        return t.astype(orig_dtype)

    features = {
        f"layer_{idx}_pre_attn": feat(xnorm),
        f"layer_{idx}_attn": feat(attn_o),
        f"layer_{idx}_mlp": feat(mlp_o),
    }

    x_out = x_res.reshape(B, S_pad, D)
    if S_pad > S:
        x_out = x_out[:, :S, :]
    x_out = jnp.transpose(x_out, (1, 0, 2)).astype(orig_dtype)  # back to [S,B,D]
    return x_out, features


# ----------------------------------------------------------------------------
if __name__ == "__main__":
    # Small, lane-aligned config: d_model=128, 2 heads (dh=64), seq=8, batch=2.
    S, B, D, H = 8, 2, 128, 2

    key = jax.random.PRNGKey(0)
    kx, kp = jax.random.split(key)
    x = jax.random.normal(kx, (S, B, D), jnp.float32)
    params = init_params(kp, D)

    x_out, feats = residual_attention_block_forward(params, x, idx=0, heads=H)
    jax.block_until_ready((x_out, feats))

    # sanity on output structure / values
    assert x_out.shape == (S, B, D)
    for name in ("pre_attn", "attn", "mlp"):
        assert feats[f"layer_0_{name}"].shape == (B, S, D)
    assert bool(jnp.isfinite(x_out).all())
    assert all(bool(jnp.isfinite(v).all()) for v in feats.values())
    print("KERNEL_OK")
</pallas_src>

<mosaic_0001>
module attributes {stable_mosaic.version = 11 : i64} {
  func.func @_ln_linear_kernel(%arg0: i32, %arg1: i32, %arg2: memref<32x128xbf16, #tpu.memory_space<vmem>>, %arg3: memref<1x128xf32, #tpu.memory_space<vmem>>, %arg4: memref<1x128xf32, #tpu.memory_space<vmem>>, %arg5: memref<128x384xbf16, #tpu.memory_space<vmem>>, %arg6: memref<1x384xf32, #tpu.memory_space<vmem>>, %arg7: memref<32x384xbf16, #tpu.memory_space<vmem>>, %arg8: memref<32x128xbf16, #tpu.memory_space<vmem>>, %arg9: memref<32x128xbf16, #tpu.memory_space<vmem>>) attributes {dimension_semantics = [#tpu.dimension_semantics<parallel>, #tpu.dimension_semantics<arbitrary>], iteration_bounds = array<i64: 1, 1>, scalar_prefetch = 0 : i64, scratch_operands = 1 : i64, tpu.core_type = #tpu.core_type<tc>, window_params = [{transform_indices = @transform_0, window_bounds = array<i64: 32, 128>}, {pipeline_mode = #tpu.pipeline_mode<synchronous>, transform_indices = @transform_1, window_bounds = array<i64: 1, 128>}, {pipeline_mode = #tpu.pipeline_mode<synchronous>, transform_indices = @transform_2, window_bounds = array<i64: 1, 128>}, {transform_indices = @transform_3, window_bounds = array<i64: 128, 384>}, {transform_indices = @transform_4, window_bounds = array<i64: 1, 384>}, {transform_indices = @transform_5, window_bounds = array<i64: 32, 384>}, {transform_indices = @transform_6, window_bounds = array<i64: 32, 128>}]} {
    %c0_i32 = arith.constant 0 : i32
    %0 = arith.cmpi eq, %arg1, %c0_i32 : i32
    %1 = arith.extui %0 : i1 to i32
    %c0_i32_0 = arith.constant 0 : i32
    %2 = arith.cmpi ne, %1, %c0_i32_0 : i32
    scf.if %2 {
      %c0_8 = arith.constant 0 : index
      %c0_9 = arith.constant 0 : index
      %11 = vector.load %arg2[%c0_8, %c0_9] : memref<32x128xbf16, #tpu.memory_space<vmem>>, vector<32x128xbf16>
      %12 = arith.extf %11 : vector<32x128xbf16> to vector<32x128xf32>
      %cst_10 = arith.constant dense<0.000000e+00> : vector<32xf32>
      %13 = vector.multi_reduction <add>, %12, %cst_10 [1] : vector<32x128xf32> to vector<32xf32>
      %14 = vector.shape_cast %13 : vector<32xf32> to vector<32x1xf32>
      %cst_11 = arith.constant 1.280000e+02 : f32
      %15 = vector.broadcast %cst_11 : f32 to vector<32x1xf32>
      %16 = arith.divf %14, %15 : vector<32x1xf32>
      %17 = vector.broadcast %16 : vector<32x1xf32> to vector<32x128xf32>
      %18 = arith.subf %12, %17 : vector<32x128xf32>
      %19 = arith.mulf %18, %18 : vector<32x128xf32>
      %cst_12 = arith.constant dense<0.000000e+00> : vector<32xf32>
      %20 = vector.multi_reduction <add>, %19, %cst_12 [1] : vector<32x128xf32> to vector<32xf32>
      %21 = vector.shape_cast %20 : vector<32xf32> to vector<32x1xf32>
      %cst_13 = arith.constant 1.280000e+02 : f32
      %22 = vector.broadcast %cst_13 : f32 to vector<32x1xf32>
      %23 = arith.divf %21, %22 : vector<32x1xf32>
      %cst_14 = arith.constant 9.99999974E-6 : f32
      %24 = vector.broadcast %cst_14 : f32 to vector<32x1xf32>
      %25 = arith.addf %23, %24 : vector<32x1xf32>
      %26 = math.rsqrt %25 : vector<32x1xf32>
      %27 = vector.broadcast %26 : vector<32x1xf32> to vector<32x128xf32>
      %28 = arith.mulf %18, %27 : vector<32x128xf32>
      %c0_15 = arith.constant 0 : index
      %c0_16 = arith.constant 0 : index
      %29 = vector.load %arg3[%c0_15, %c0_16] : memref<1x128xf32, #tpu.memory_space<vmem>>, vector<1x128xf32>
      %30 = vector.broadcast %29 : vector<1x128xf32> to vector<32x128xf32>
      %31 = arith.mulf %28, %30 : vector<32x128xf32>
      %c0_17 = arith.constant 0 : index
      %c0_18 = arith.constant 0 : index
      %32 = vector.load %arg4[%c0_17, %c0_18] : memref<1x128xf32, #tpu.memory_space<vmem>>, vector<1x128xf32>
      %33 = vector.broadcast %32 : vector<1x128xf32> to vector<32x128xf32>
      %34 = arith.addf %31, %33 : vector<32x128xf32>
      %35 = arith.truncf %34 : vector<32x128xf32> to vector<32x128xbf16>
      %c0_19 = arith.constant 0 : index
      %c0_20 = arith.constant 0 : index
      %36 = vector.load %arg9[%c0_19, %c0_20] : memref<32x128xbf16, #tpu.memory_space<vmem>>, vector<32x128xbf16>
      tpu.vector_store %arg9[%c0_19, %c0_20], %35 {strides = array<i32>} : memref<32x128xbf16, #tpu.memory_space<vmem>>, vector<32x128xbf16>,
      %37 = arith.truncf %34 : vector<32x128xf32> to vector<32x128xbf16>
      %c0_21 = arith.constant 0 : index
      %c0_22 = arith.constant 0 : index
      %38 = vector.load %arg8[%c0_21, %c0_22] : memref<32x128xbf16, #tpu.memory_space<vmem>>, vector<32x128xbf16>
      tpu.vector_store %arg8[%c0_21, %c0_22], %37 {strides = array<i32>} : memref<32x128xbf16, #tpu.memory_space<vmem>>, vector<32x128xbf16>,
    } else {
    }
    %c0 = arith.constant 0 : index
    %c0_1 = arith.constant 0 : index
    %3 = vector.load %arg9[%c0, %c0_1] : memref<32x128xbf16, #tpu.memory_space<vmem>>, vector<32x128xbf16>
    %c0_2 = arith.constant 0 : index
    %c0_3 = arith.constant 0 : index
    %4 = vector.load %arg5[%c0_2, %c0_3] : memref<128x384xbf16, #tpu.memory_space<vmem>>, vector<128x384xbf16>
    %cst = arith.constant dense<0.000000e+00> : vector<32x384xf32>
    %5 = tpu.matmul %3, %4, %cst {dimension_numbers = #tpu.dot_dimension_numbers<[1], [0], [0], [1], [0, 0, 1, 1], [], []>} : vector<32x128xbf16>, vector<128x384xbf16>, vector<32x384xf32> -> vector<32x384xf32>
    %c0_4 = arith.constant 0 : index
    %c0_5 = arith.constant 0 : index
    %6 = vector.load %arg6[%c0_4, %c0_5] : memref<1x384xf32, #tpu.memory_space<vmem>>, vector<1x384xf32>
    %7 = vector.broadcast %6 : vector<1x384xf32> to vector<32x384xf32>
    %8 = arith.addf %5, %7 : vector<32x384xf32>
    %9 = arith.truncf %8 : vector<32x384xf32> to vector<32x384xbf16>
    %c0_6 = arith.constant 0 : index
    %c0_7 = arith.constant 0 : index
    %10 = vector.load %arg7[%c0_6, %c0_7] : memref<32x384xbf16, #tpu.memory_space<vmem>>, vector<32x384xbf16>
    tpu.vector_store %arg7[%c0_6, %c0_7], %9 {strides = array<i32>} : memref<32x384xbf16, #tpu.memory_space<vmem>>, vector<32x384xbf16>,
    return
  }
  func.func @transform_0(%arg0: i32, %arg1: i32) -> (i32, i32) {
    %c0_i32 = arith.constant 0 : i32
    %c0_i32_0 = arith.constant 0 : i32
    return %arg0, %c0_i32 : i32, i32
  }
  func.func @transform_1(%arg0: i32, %arg1: i32) -> (i32, i32) {
    %c0_i32 = arith.constant 0 : i32
    %c0_i32_0 = arith.constant 0 : i32
    %c0_i32_1 = arith.constant 0 : i32
    return %c0_i32, %c0_i32_0 : i32, i32
  }
  func.func @transform_2(%arg0: i32, %arg1: i32) -> (i32, i32) {
    %c0_i32 = arith.constant 0 : i32
    %c0_i32_0 = arith.constant 0 : i32
    %c0_i32_1 = arith.constant 0 : i32
    return %c0_i32, %c0_i32_0 : i32, i32
  }
  func.func @transform_3(%arg0: i32, %arg1: i32) -> (i32, i32) {
    %c0_i32 = arith.constant 0 : i32
    %c0_i32_0 = arith.constant 0 : i32
    return %c0_i32, %arg1 : i32, i32
  }
  func.func @transform_4(%arg0: i32, %arg1: i32) -> (i32, i32) {
    %c0_i32 = arith.constant 0 : i32
    %c0_i32_0 = arith.constant 0 : i32
    return %c0_i32, %arg1 : i32, i32
  }
  func.func @transform_5(%arg0: i32, %arg1: i32) -> (i32, i32) {
    %c0_i32 = arith.constant 0 : i32
    return %arg0, %arg1 : i32, i32
  }
  func.func @transform_6(%arg0: i32, %arg1: i32) -> (i32, i32) {
    %c0_i32 = arith.constant 0 : i32
    %c0_i32_0 = arith.constant 0 : i32
    return %arg0, %c0_i32 : i32, i32
  }
}

</mosaic_0001>

<bundles_post_ra>
// kernel: tpu_custom_call.1
= control target key start
LH: loop header
LB: loop body
LE: loop exit
PB: predicated region body
PF: predicated region fallthrough
CT: control target
= control target key end

     0   :  { %12 = vsyncpa [#allocation4], 0  ;;  %s1038_s0 = inlined_call_operand.hbm [shape: bf16[32,128], index: 0, kind: input, shape index: {}]   ;;  %s1039_s1 = inlined_call_operand.hbm [shape: f32[1,128], index: 1, kind: input, shape index: {}]   ;;  %s1040_s2 = inlined_call_operand.hbm [shape: f32[1,128], index: 2, kind: input, shape index: {}]   ;;  %s1041_s3 = inlined_call_operand.hbm [shape: bf16[128,384], index: 3, kind: input, shape index: {}]   ;;  %s1042_s4 = inlined_call_operand.hbm [shape: f32[1,384], index: 4, kind: input, shape index: {}]   ;;  %s1043_s5 = inlined_call_operand.hbm [shape: bf16[32,384], index: 5, kind: output, shape index: {0}]   ;;  %s1044_s6 = inlined_call_operand.hbm [shape: bf16[32,128], index: 6, kind: output, shape index: {1}]  }
   0x1   :  { %13 = vsyncpa [#allocation7], 0 }
   0x2   :  { %14 = vsyncpa [#allocation10], 0 }
   0x3   :  { %15 = vsyncpa [#allocation5], 0 }
   0x4   :  { %16 = vsyncpa [#allocation14], 0  ;;  %s868_s21 = smov [#allocation6]   ;;  %s869_s23 = smov [#allocation9]  }
   0x5   :  { %s35_s22 = sshll.u32 %s868_s21, 4  ;;  %s54_s24 = sshll.u32 %s869_s23, 4  ;;  %s36_s22 = int_to_ptr.vmem [resolvable:$true] %s35_s22  ;;  %s915_s24 = int_to_ptr.vmem [resolvable:$true] %s54_s24 }
   0x6   :  { %s704_s27 = scalar_lea.hbm %s1039_s1, 16 }
   0x7   :  { %p705_p0 = scmp.ne.s32.totalorder %s1039_s1, %s704_s27  ;;  %p708_p1 = scmp.lt.u32.totalorder %s704_s27, %s1039_s1 }
   0x9   :  { %p710_p2 = pnand %p708_p1, %p705_p0 }
   0xb   :  { %713 = shalt.err (!%p710_p2)
}
   0xc   :  { %s714_s8 = scalar_lea.vmem %s36_s22, 16  ;;  %s718_s9 = scalar_lea.vmem %s36_s22, 32 }
   0xd   :  { %p715_p3 = scmp.ne.s32.totalorder %s36_s22, %s714_s8  ;;  %p719_p4 = scmp.lt.s32.totalorder %s36_s22, %s36_s22 }
   0xe   :  { %p720_p5 = scmp.lt.s32.totalorder %s718_s9, %s714_s8 }
  0x10   :  { %p721_p6 = por %p720_p5, %p719_p4 }
  0x12   :  { %p722_p7 = pnand %p721_p6, %p715_p3 }
  0x14   :  { %725 = shalt.err (!%p722_p7)
}
  0x15   :  { %38 = dma.hbm_to_vmem [thread:$0]  %s1039_s1, 16, %s36_s22, [#allocation7]  }
  0x16   :  { %s726_s14 = scalar_lea.hbm %s1041_s3, 3072 }
  0x17   :  { %p727_p8 = scmp.ne.s32.totalorder %s1041_s3, %s726_s14  ;;  %p730_p9 = scmp.lt.u32.totalorder %s726_s14, %s1041_s3 }
  0x19   :  { %p732_p10 = pnand %p730_p9, %p727_p8 }
  0x1b   :  { %735 = shalt.err (!%p732_p10)
}
  0x1c   :  { %s736_s19 = scalar_lea.vmem %s915_s24, 3072  ;;  %p741_p12 = scmp.lt.s32.totalorder %s915_s24, %s915_s24 }
  0x1d   :  { %p737_p11 = scmp.ne.s32.totalorder %s915_s24, %s736_s19  ;;  %p742_p13 = scmp.lt.s32.totalorder %s736_s19, %s736_s19 }
  0x1f   :  { %p743_p0 = por %p742_p13, %p741_p12 }
  0x21   :  { %p744_p1 = pnand %p743_p0, %p737_p11 }
  0x23   :  { %747 = shalt.err (!%p744_p1)
}
  0x24   :  { %s870_s1 = smov 192   ;;  %s871_s20 = smov 12  }
  0x25   :  { %60 = dma.hbm_to_vmem [thread:$0]  %s1041_s3, 3072, %s915_s24, [#allocation10], %s870_s1, %s870_s1, %s871_s20  }
  0x26   :  { %s872_s23 = smov [#allocation3]   ;;  %s748_s28 = scalar_lea.hbm %s1038_s0, 256 }
  0x27   :  { %s22_s25 = sshll.u32 %s872_s23, 4  ;;  %p749_p2 = scmp.ne.s32.totalorder %s1038_s0, %s748_s28  ;;  %s23_s25 = int_to_ptr.vmem [resolvable:$true] %s22_s25 }
  0x28   :  { %p752_p3 = scmp.lt.u32.totalorder %s748_s28, %s1038_s0 }
  0x2a   :  { %p754_p4 = pnand %p752_p3, %p749_p2 }
  0x2c   :  { %757 = shalt.err (!%p754_p4)
}
  0x2d   :  { %s758_s9 = scalar_lea.vmem %s23_s25, 256  ;;  %p763_p6 = scmp.lt.s32.totalorder %s23_s25, %s23_s25 }
  0x2e   :  { %p759_p5 = scmp.ne.s32.totalorder %s23_s25, %s758_s9  ;;  %p764_p7 = scmp.lt.s32.totalorder %s758_s9, %s758_s9 }
  0x30   :  { %p765_p8 = por %p764_p7, %p763_p6 }
  0x32   :  { %p766_p9 = pnand %p765_p8, %p759_p5 }
  0x34   :  { %769 = shalt.err (!%p766_p9)
}
  0x35   :  { %s873_s3 = smov 64   ;;  %s874_s24 = smov 4  }
  0x36   :  { %28 = dma.hbm_to_vmem [thread:$0]  %s1038_s0, 256, %s23_s25, [#allocation4], %s873_s3, %s873_s3, %s874_s24  }
  0x37   :  { %s875_s12 = smov [#allocation8]   ;;  %s876_s14 = smov [#allocation11]  }
  0x38   :  { %s45_s13 = sshll.u32 %s875_s12, 4  ;;  %s67_s15 = sshll.u32 %s876_s14, 4  ;;  %s46_s13 = int_to_ptr.vmem [resolvable:$true] %s45_s13  ;;  %s68_s15 = int_to_ptr.vmem [resolvable:$true] %s67_s15 }
  0x39   :  { %s770_s18 = scalar_lea.hbm %s1040_s2, 16 }
  0x3a   :  { %p771_p10 = scmp.ne.s32.totalorder %s1040_s2, %s770_s18  ;;  %p774_p11 = scmp.lt.u32.totalorder %s770_s18, %s1040_s2 }
  0x3c   :  { %p776_p12 = pnand %p774_p11, %p771_p10 }
  0x3e   :  { %779 = shalt.err (!%p776_p12)
}
  0x3f   :  { %s780_s0 = scalar_lea.vmem %s46_s13, 16  ;;  %s784_s25 = scalar_lea.vmem %s46_s13, 32 }
  0x40   :  { %p781_p13 = scmp.ne.s32.totalorder %s46_s13, %s780_s0  ;;  %p785_p0 = scmp.lt.s32.totalorder %s46_s13, %s46_s13 }
  0x41   :  { %p786_p1 = scmp.lt.s32.totalorder %s784_s25, %s780_s0 }
  0x43   :  { %p787_p2 = por %p786_p1, %p785_p0 }
  0x45   :  { %p788_p3 = pnand %p787_p2, %p781_p13 }
  0x47   :  { %791 = shalt.err (!%p788_p3)
}
  0x48   :  { %48 = dma.hbm_to_vmem [thread:$0]  %s1040_s2, 16, %s46_s13, [#allocation7]  }
  0x49   :  { %s792_s30 = scalar_lea.hbm %s1042_s4, 48 }
  0x4a   :  { %p793_p4 = scmp.ne.s32.totalorder %s1042_s4, %s792_s30  ;;  %p796_p5 = scmp.lt.u32.totalorder %s792_s30, %s1042_s4 }
  0x4c   :  { %p798_p6 = pnand %p796_p5, %p793_p4 }
  0x4e   :  { %801 = shalt.err (!%p798_p6)
}
  0x4f   :  { %s802_s11 = scalar_lea.vmem %s68_s15, 48  ;;  %s806_s12 = scalar_lea.vmem %s68_s15, 64 }
  0x50   :  { %p803_p7 = scmp.ne.s32.totalorder %s68_s15, %s802_s11  ;;  %p807_p8 = scmp.lt.s32.totalorder %s68_s15, %s68_s15 }
  0x51   :  { %p808_p9 = scmp.lt.s32.totalorder %s806_s12, %s802_s11 }
  0x53   :  { %p809_p10 = por %p808_p9, %p807_p8 }
  0x55   :  { %p810_p11 = pnand %p809_p10, %p803_p7 }
  0x57   :  { %813 = shalt.err (!%p810_p11)
}
  0x58   :  { %70 = dma.hbm_to_vmem [thread:$0]  %s1042_s4, 48, %s68_s15, [#allocation10]  }
  0x59   :  { %858 = dma.done.wait [#allocation4], 256  }
  0x5a   :  { %859 = vsyncadd [#allocation4], 4294967040 }
  0x5b   :  { %860 = dma.done.wait [#allocation7], 32  }
  0x5c   :  { %861 = vsyncadd [#allocation7], 4294967264 }
  0x5d   :  { %862 = dma.done.wait [#allocation10], 3120  }
  0x5e   :  { %863 = vsyncadd [#allocation10], 4294964176  ;;  %v603_v0 = vld [vmem:[#allocation3] sm:$0xff]   ;;  %v620_v1 = vld [vmem:[#allocation3 + $0x8] sm:$0xff]   ;;  %v877_v41 = vmov 0   ;;  %s878_s4 = smov [#allocation13]  }
  0x5f   :  { %v604_v2 = vunpack.c.l.bf16 %v603_v0  ;;  %v608_v3 = vunpack.c.l.bf16 %v620_v1  ;;  %v605_v4 = vunpack.c.h.bf16 %v603_v0  ;;  %v609_v5 = vunpack.c.h.bf16 %v620_v1  ;;  %v664_v6 = vld [vmem:[#allocation9 + $0x4] ss:$12 sps:$4 sm:$0xff]   ;;  %v666_v7 = vld [vmem:[#allocation9] ss:$12 sps:$4 sm:$0xff]   ;;  %v667_v8 = vld [vmem:[#allocation9 + $0x1c] ss:$12 sps:$4 sm:$0xff]   ;;  %399 = vmatprep.mubr.bf16.mxu0 %v877_v41 }
  0x60   :  { %v669_v9 = vld [vmem:[#allocation9 + $0x8] ss:$12 sps:$4 sm:$0xff]   ;;  %367 = vmatprep.subr.bf16.mxu0 %v664_v6  ;;  %v670_v26 = vld [vmem:[#allocation9 + $0x18] ss:$12 sps:$4 sm:$0xff]   ;;  %v673_v28 = vld [vmem:[#allocation9 + $0x20] ss:$12 sps:$4 sm:$0xff]  }
  0x61   :  { %99 = vadd.xlane.f32.xlu0 %v604_v2  ;;  %103 = vadd.xlane.f32.xlu1 %v608_v3  ;;  %v671_v27 = vld [vmem:[#allocation9 + $0x34] ss:$12 sps:$4 sm:$0xff]   ;;  %v674_v29 = vld [vmem:[#allocation9 + $0x30] ss:$12 sps:$4 sm:$0xff]   ;;  %v675_v30 = vld [vmem:[#allocation9 + $0x4c] ss:$12 sps:$4 sm:$0xff]  }
  0x62   :  { %368 = vmatpush1.bf16.msra.mxu0 %v666_v7  ;;  %632 = vmatprep.subr.bf16.mxu1 %v669_v9  ;;  %v677_v31 = vld [vmem:[#allocation9 + $0x38] ss:$12 sps:$4 sm:$0xff]   ;;  %v678_v32 = vld [vmem:[#allocation9 + $0x48] ss:$12 sps:$4 sm:$0xff]   ;;  %v681_v34 = vld [vmem:[#allocation9 + $0x50] ss:$12 sps:$4 sm:$0xff]  }
  0x63   :  { %369 = vmatprep.subr.bf16.mxu0 %v667_v8  ;;  %633 = vmatpush3.bf16.msra.mxu1 %v669_v9  ;;  %v679_v33 = vld [vmem:[#allocation9 + $0x64] ss:$12 sps:$4 sm:$0xff]   ;;  %v682_v35 = vld [vmem:[#allocation9 + $0x60] ss:$12 sps:$4 sm:$0xff]   ;;  %v683_v36 = vld [vmem:[#allocation9 + $0x7c] ss:$12 sps:$4 sm:$0xff]  }
  0x64   :  { %634 = vmatprep.subr.bf16.mxu1 %v673_v28  ;;  %v685_v37 = vld [vmem:[#allocation9 + $0x68] ss:$12 sps:$4 sm:$0xff]   ;;  %v686_v38 = vld [vmem:[#allocation9 + $0x78] ss:$12 sps:$4 sm:$0xff]   ;;  %v689_v40 = vld [vmem:[#allocation9 + $0x80] ss:$12 sps:$4 sm:$0xff]  }
  0x65   :  { %101 = vadd.xlane.f32.xlu0 %v605_v4  ;;  %105 = vadd.xlane.f32.xlu1 %v609_v5  ;;  %v687_v39 = vld [vmem:[#allocation9 + $0x94] ss:$12 sps:$4 sm:$0xff]   ;;  %v690_v42 = vld [vmem:[#allocation9 + $0x90] ss:$12 sps:$4 sm:$0xff]   ;;  %v691_v43 = vld [vmem:[#allocation9 + $0xac] ss:$12 sps:$4 sm:$0xff]  }
  0x66   :  { %370 = vmatpush1.bf16.msra.mxu0 %v670_v26  ;;  %v693_v44 = vld [vmem:[#allocation9 + $0x98] ss:$12 sps:$4 sm:$0xff]   ;;  %v694_v45 = vld [vmem:[#allocation9 + $0xa8] ss:$12 sps:$4 sm:$0xff]   ;;  %v695_v46 = vld [vmem:[#allocation9 + $0xb0] ss:$12 sps:$4 sm:$0xff]  }
  0x67   :  { %371 = vmatprep.subr.bf16.mxu0 %v671_v27  ;;  %635 = vmatpush3.bf16.msra.mxu1 %v673_v28  ;;  %v552_v61 = vld [vmem:[#allocation6] ss:$0 sm:$0xff]  ;;  %s534_s14 = sshll.u32 %s878_s4, 4  ;;  %s535_s14 = int_to_ptr.vmem [resolvable:$true] %s534_s14 }
  0x68   :  { %636 = vmatprep.subr.bf16.mxu1 %v677_v31  ;;  %s814_s15 = scalar_lea.vmem %s535_s14, 256  ;;  %p819_p13 = scmp.lt.s32.totalorder %s535_s14, %s535_s14 }
  0x69   :  { %p815_p12 = scmp.ne.s32.totalorder %s535_s14, %s814_s15  ;;  %p820_p0 = scmp.lt.s32.totalorder %s814_s15, %s814_s15 }
  0x6a   :  { %372 = vmatpush1.bf16.msra.mxu0 %v674_v29 }
  0x6b   :  { %373 = vmatprep.subr.bf16.mxu0 %v675_v30  ;;  %637 = vmatpush3.bf16.msra.mxu1 %v677_v31  ;;  %p821_p1 = por %p820_p0, %p819_p13 }
  0x6c   :  { %638 = vmatprep.subr.bf16.mxu1 %v681_v34 }
  0x6d   :  { %p822_p2 = pnand %p821_p1, %p815_p12 }
  0x6e   :  { %374 = vmatpush1.bf16.msra.mxu0 %v678_v32 }
  0x6f   :  { %375 = vmatprep.subr.bf16.mxu0 %v679_v33  ;;  %639 = vmatpush3.bf16.msra.mxu1 %v681_v34 }
  0x70   :  { %640 = vmatprep.subr.bf16.mxu1 %v685_v37 }
  0x72   :  { %376 = vmatpush1.bf16.msra.mxu0 %v682_v35 }
  0x73   :  { %377 = vmatprep.subr.bf16.mxu0 %v683_v36  ;;  %641 = vmatpush3.bf16.msra.mxu1 %v685_v37 }
  0x74   :  { %642 = vmatprep.subr.bf16.mxu1 %v689_v40 }
  0x76   :  { %378 = vmatpush1.bf16.msra.mxu0 %v686_v38 }
  0x77   :  { %379 = vmatprep.subr.bf16.mxu0 %v687_v39  ;;  %643 = vmatpush3.bf16.msra.mxu1 %v689_v40 }
  0x78   :  { %644 = vmatprep.subr.bf16.mxu1 %v693_v44 }
  0x7a   :  { %380 = vmatpush1.bf16.msra.mxu0 %v690_v42 }
  0x7b   :  { %381 = vmatprep.subr.bf16.mxu0 %v691_v43  ;;  %645 = vmatpush3.bf16.msra.mxu1 %v693_v44 }
  0x7c   :  { %646 = vmatprep.subr.bf16.mxu1 %v695_v46 }
  0x7e   :  { %382 = vmatpush1.bf16.msra.mxu0 %v694_v45 }
  0x7f   :  { %647 = vmatpush3.bf16.msra.mxu1 %v695_v46 }
  0xee   :  { %v100_v10 = vpop.xlane.xlu0 %99  ;;  %v104_v11 = vpop.xlane.xlu1 %103 }
  0xef   :  { %v108_v12 = vmul.f32 0.0078125, %v100_v10  ;;  %v110_v13 = vmul.f32 0.0078125, %v104_v11 }
  0xf1   :  { %v988_v14 = vsub.f32 %v604_v2, %v108_v12  ;;  %v990_v15 = vsub.f32 %v608_v3, %v110_v13  ;;  %v553_v2 = vld [vmem:[#allocation8] ss:$0 sm:$0xff] }
  0xf2   :  { %v102_v16 = vpop.xlane.xlu0 %101  ;;  %v106_v17 = vpop.xlane.xlu1 %105 }
  0xf3   :  { %v109_v18 = vmul.f32 0.0078125, %v102_v16  ;;  %v116_v19 = vmul.f32 %v988_v14, %v988_v14  ;;  %v111_v20 = vmul.f32 0.0078125, %v106_v17  ;;  %v118_v23 = vmul.f32 %v990_v15, %v990_v15 }
  0xf5   :  { %v994_v21 = vsub.f32 %v605_v4, %v109_v18  ;;  %120 = vadd.xlane.f32.xlu0 %v116_v19  ;;  %v996_v22 = vsub.f32 %v609_v5, %v111_v20 }
  0xf7   :  { %v117_v24 = vmul.f32 %v994_v21, %v994_v21  ;;  %v119_v25 = vmul.f32 %v996_v22, %v996_v22 }
  0xf9   :  { %124 = vadd.xlane.f32.xlu0 %v118_v23  ;;  %122 = vadd.xlane.f32.xlu1 %v117_v24 }
  0xfd   :  { %126 = vadd.xlane.f32.xlu1 %v119_v25 }
 0x182   :  { %v121_v47 = vpop.xlane.xlu0 %120 }
 0x183   :  { %v128_v48 = vmul.f32 0.0078125, %v121_v47 }
 0x185   :  { %v132_v49 = vadd.f32 1e-05, %v128_v48 }
 0x186   :  { %v123_v50 = vpop.xlane.xlu1 %122  ;;  %v125_v51 = vpop.xlane.xlu0 %124 }
 0x187   :  { %696 = vrsqrt.f32 %v132_v49  ;;  %v129_v52 = vmul.f32 0.0078125, %v123_v50  ;;  %v130_v53 = vmul.f32 0.0078125, %v125_v51 }
 0x189   :  { %v133_v54 = vadd.f32 1e-05, %v129_v52  ;;  %v134_v55 = vadd.f32 1e-05, %v130_v53 }
 0x18a   :  { %v127_v56 = vpop.xlane.xlu1 %126 }
 0x18b   :  { %698 = vrsqrt.f32 %v133_v54  ;;  %v131_v57 = vmul.f32 0.0078125, %v127_v56 }
 0x18c   :  { %700 = vrsqrt.f32 %v134_v55 }
 0x18d   :  { %v135_v58 = vadd.f32 1e-05, %v131_v57 }
 0x18f   :  { %702 = vrsqrt.f32 %v135_v58 }
 0x191   :  { %v697_v59 = vpop.eup %696 }
 0x192   :  { %v140_v60 = vmul.f32 %v697_v59, %v988_v14 }
 0x194   :  { %v151_v1 = vmul.f32 %v552_v61, %v140_v60 }
 0x195   :  { %v699_v62 = vpop.eup %698 }
 0x196   :  { %v701_v63 = vpop.eup %700  ;;  %v141_v0 = vmul.f32 %v699_v62, %v994_v21  ;;  %v162_v6 = vadd.f32 %v553_v2, %v151_v1 }
 0x197   :  { %v142_v3 = vmul.f32 %v701_v63, %v990_v15 }
 0x198   :  { %v152_v4 = vmul.f32 %v552_v61, %v141_v0 }
 0x199   :  { %v703_v5 = vpop.eup %702  ;;  %v153_v9 = vmul.f32 %v552_v61, %v142_v3 }
 0x19a   :  { %v163_v7 = vadd.f32 %v553_v2, %v152_v4  ;;  %v143_v8 = vmul.f32 %v703_v5, %v996_v22 }
 0x19b   :  { %v164_v12 = vadd.f32 %v553_v2, %v153_v9 }
 0x19c   :  { %v166_v10 = vpack.c.bf16 %v163_v7, %v162_v6  ;;  %v154_v11 = vmul.f32 %v552_v61, %v143_v8 }
 0x19e   :  { %400 = vmatmul.mubr.bf16.vlgmr.msra.gmra.mrb[0].mxu0 %v166_v10  ;;  %614 = vst [vmem:[#allocation13] sm:$0xff] %v166_v10   ;;  %648 = vmatprep.mubr.bf16.mxu1 %v166_v10  ;;  %v165_v13 = vadd.f32 %v553_v2, %v154_v11 }
 0x19f   :  { %409 = vmatprep.mubr.bf16.mxu0 %v877_v41 }
 0x1a0   :  { %v167_v14 = vpack.c.bf16 %v165_v13, %v164_v12 }
 0x1a2   :  { %649 = vmatmul.mubr.bf16.vlgmr.msra.gmra.mrb[0].mxu1 %v167_v14  ;;  %621 = vst [vmem:[#allocation13 + $0x8] sm:$0xff] %v167_v14  }
 0x1a6   :  { %410 = vmatmul.mubr.bf16.gmra.mrb[4].mxu0 %v167_v14 }
 0x1a7   :  { %825 = shalt.err (!%p822_p2)
}
 0x1a8   :  { %s826_s18 = scalar_lea.hbm %s1044_s6, 256 }
 0x1a9   :  { %p827_p3 = scmp.ne.s32.totalorder %s1044_s6, %s826_s18  ;;  %p830_p4 = scmp.lt.u32.totalorder %s826_s18, %s1044_s6 }
 0x1ab   :  { %p832_p5 = pnand %p830_p4, %p827_p3 }
 0x1ad   :  { %835 = shalt.err (!%p832_p5)
}
 0x1ae   :  { %540 = dma.vmem_to_hbm [thread:$0]  %s535_s14, 256, %s1044_s6, [#allocation14], %s873_s3, %s873_s3, %s874_s24   ;;  %v224_v15 = vlaneseq  ;;  %v222_v18 = vld [vmem:[#allocation11] sm:$0x7] }
 0x1af   :  { %s879_s6 = smov [#allocation12]  }
 0x1b0   :  { %v225_v16 = vshrl.u32 %v224_v15, 7  ;;  %s522_s3 = sshll.u32 %s879_s6, 4  ;;  %s523_s3 = int_to_ptr.vmem [resolvable:$true] %s522_s3 }
 0x1b1   :  { %s836_s24 = scalar_lea.vmem %s523_s3, 768  ;;  %p841_p7 = scmp.lt.s32.totalorder %s523_s3, %s523_s3 }
 0x1b2   :  { %v226_v17 = vsub.s32 0, %v225_v16  ;;  %v230_v19 = vsub.s32 1, %v225_v16  ;;  %v234_v21 = vsub.s32 2, %v225_v16  ;;  %p837_p6 = scmp.ne.s32.totalorder %s523_s3, %s836_s24  ;;  %p842_p8 = scmp.lt.s32.totalorder %s836_s24, %s836_s24 }
 0x1b4   :  { %v227_v20 = vrot.slane %v222_v18, %v226_v17  ;;  %v231_v22 = vrot.slane %v222_v18, %v230_v19  ;;  %v235_v26 = vrot.slane %v222_v18, %v234_v21  ;;  %p843_p9 = por %p842_p8, %p841_p7 }
 0x1b6   :  { %p844_p10 = pnand %p843_p9, %p837_p6 }
 0x271   :  { %v401_v23 = vpop.f32.mrb[0].mxu0 }
 0x272   :  { %v402_v24 = vadd.f32 %v401_v23, %v227_v20  ;;  %v403_v25 = vpop.f32.mrb[1].mxu0 }
 0x273   :  { %v404_v27 = vadd.f32 %v403_v25, %v231_v22  ;;  %v405_v28 = vpop.f32.mrb[2].mxu0 }
 0x274   :  { %v406_v29 = vadd.f32 %v405_v28, %v227_v20  ;;  %v407_v30 = vpop.f32.mrb[3].mxu0 }
 0x275   :  { %v594_v31 = vpack.c.bf16 %v404_v27, %v402_v24  ;;  %v408_v32 = vadd.f32 %v407_v30, %v231_v22  ;;  %v650_v33 = vpop.f32.mrb[0].mxu1 }
 0x276   :  { %v463_v34 = vadd.f32 %v650_v33, %v235_v26  ;;  %v454_v35 = vpop.f32.mrb[1].mxu1 }
 0x277   :  { %509 = vst [vmem:[#allocation12] sm:$0xff] %v594_v31  ;;  %v596_v36 = vpack.c.bf16 %v408_v32, %v406_v29  ;;  %v455_v37 = vadd.f32 %v454_v35, %v235_v26  ;;  %v651_v38 = vpop.f32.mrb[2].mxu1 }
 0x278   :  { %v599_v39 = vpack.c.bf16 %v463_v34, %v463_v34  ;;  %v466_v40 = vadd.f32 %v651_v38, %v235_v26  ;;  %v457_v41 = vpop.f32.mrb[3].mxu1 }
 0x279   :  { %511 = vst [vmem:[#allocation12 + $0xc] sm:$0xff] %v596_v36  ;;  %v595_v42 = vpack.c.bf16 %v455_v37, %v455_v37  ;;  %v458_v43 = vadd.f32 %v457_v41, %v235_v26  ;;  %v411_v44 = vpop.f32.mrb[4].mxu0 }
 0x27a   :  { %514 = vst [vmem:[#allocation12 + $0x20] sm:$0xf] %v599_v39  ;;  %v601_v45 = vpack.c.bf16 %v466_v40, %v466_v40  ;;  %v412_v46 = vadd.f32 %v411_v44, %v227_v20  ;;  %v413_v47 = vpop.f32.mrb[5].mxu0 }
 0x27b   :  { %510 = vst [vmem:[#allocation12 + $0x8] sm:$0xf] %v595_v42  ;;  %v597_v48 = vpack.c.bf16 %v458_v43, %v458_v43  ;;  %v414_v49 = vadd.f32 %v413_v47, %v231_v22  ;;  %v415_v50 = vpop.f32.mrb[6].mxu0 }
 0x27c   :  { %516 = vst [vmem:[#allocation12 + $0x2c] sm:$0xf] %v601_v45  ;;  %v416_v51 = vadd.f32 %v415_v50, %v227_v20  ;;  %v417_v52 = vpop.f32.mrb[7].mxu0 }
 0x27d   :  { %512 = vst [vmem:[#allocation12 + $0x14] sm:$0xf] %v597_v48  ;;  %v598_v53 = vpack.c.bf16 %v414_v49, %v412_v46  ;;  %v418_v54 = vadd.f32 %v417_v52, %v231_v22 }
 0x27f   :  { %513 = vst [vmem:[#allocation12 + $0x18] sm:$0xff] %v598_v53  ;;  %v600_v55 = vpack.c.bf16 %v418_v54, %v416_v51 }
 0x281   :  { %515 = vst [vmem:[#allocation12 + $0x24] sm:$0xff] %v600_v55 }
 0x282   :  { %847 = shalt.err (!%p844_p10)
}
 0x283   :  { %s848_s28 = scalar_lea.hbm %s1043_s5, 768 }
 0x284   :  { %p849_p11 = scmp.ne.s32.totalorder %s1043_s5, %s848_s28  ;;  %p852_p12 = scmp.lt.u32.totalorder %s848_s28, %s1043_s5 }
 0x286   :  { %p854_p13 = pnand %p852_p12, %p849_p11 }
 0x288   :  { %857 = shalt.err (!%p854_p13)
}
 0x289   :  { %528 = dma.vmem_to_hbm [thread:$0]  %s523_s3, 768, %s1043_s5, [#allocation5], %s870_s1, %s870_s1, %s871_s20  }
 0x28a   :  { %864 = dma.done.wait [#allocation5], 768  }
 0x28b   :  { %865 = vsyncadd [#allocation5], 4294966528 }
 0x28c   :  { %866 = dma.done.wait [#allocation14], 256  }
 0x28d   :  { %867 = vsyncadd [#allocation14], 4294967040 }
 0x28e   :  { %547 = vsyncpa [#allocation4], 1 }
 0x28f   :  { %548 = vsyncpa [#allocation7], 1 }
 0x290   :  { %549 = vsyncpa [#allocation10], 1 }
 0x291   :  { %550 = vsyncpa [#allocation5], 1 }
 0x292   :  { %551 = vsyncpa [#allocation14], 1 }

</bundles_post_ra>
